<compile_context>
chip_gen: v7x
topology: tpu7x:2x2x1
jax: 0.10.0
libtpu: 0.0.40
codegen_flags: <defaults>
</compile_context>

<pallas_src>
import jax
import jax.numpy as jnp
from jax.experimental import pallas as pl
from jax.experimental.pallas import tpu as pltpu

LANES = 128


def _round_up(v, m):
    return ((v + m - 1) // m) * m


def affine_kernel(a_ref, c_ref, x_ref, o_ref):
    # a_ref / c_ref: (1, 1) f32 scalars in SMEM; x_ref / o_ref: (block_rows, 128) VMEM tiles.
    a = a_ref[0, 0]
    c = c_ref[0, 0]
    o_ref[...] = x_ref[...] * a + c


def line_forward(x, params, *, block_rows=4096):
    """x: (N, 1) float32. params: dict of transposed weights / row biases."""
    n = x.shape[0]
    block_rows = max(8, _round_up(block_rows, 8))

    # Collapse the three bias-carrying Linear layers into one scalar affine map.
    # (Exact: no activations in the module, so composition of affines is affine.)
    a = params["w1_t"] @ params["w2_t"] @ params["w3_t"]                                # (1, 1)
    c = (params["b1"] @ params["w2_t"] + params["b2"]) @ params["w3_t"] + params["b3"]  # (1, 1)
    a = a.astype(jnp.float32)
    c = c.astype(jnp.float32)

    # Lane-dense packing of the batch: (N, 1) -> (rows, 128) with <= 127 pad elems.
    rows = pl.cdiv(n, LANES)
    padded_n = rows * LANES

    x_flat = x.reshape(-1).astype(jnp.float32)          # bitcast reshape
    if padded_n != n:
        x_flat = jnp.pad(x_flat, (0, padded_n - n))     # tiny (<128 elems)
    x2d = x_flat.reshape(rows, LANES)

    # Tile sizing:
    #   - floor of 512 rows (256 KiB) so streaming sits at ~85%+ of HBM roofline
    #   - aim for ~8 grid steps on large batches so "parallel" splits across
    #     v7x's two TensorCores
    #   - ceiling of `block_rows` (default 4096 rows = 2 MiB/tile) for VMEM.
    min_tile = min(512, block_rows, _round_up(rows, 8))
    split_target = _round_up(pl.cdiv(rows, 8), 8)       # tile giving ~8 steps
    br = max(min_tile, min(block_rows, split_target))
    grid = (pl.cdiv(rows, br),)                         # partial last block OK

    smem_spec = pl.BlockSpec(memory_space=pltpu.MemorySpace.SMEM)

    out2d = pl.pallas_call(
        affine_kernel,
        out_shape=jax.ShapeDtypeStruct((rows, LANES), jnp.float32),
        grid=grid,
        in_specs=[
            smem_spec,                                            # a (scalar)
            smem_spec,                                            # c (scalar)
            pl.BlockSpec((br, LANES), lambda i: (i, 0)),          # x tile
        ],
        out_specs=pl.BlockSpec((br, LANES), lambda i: (i, 0)),
        compiler_params=pltpu.CompilerParams(
            dimension_semantics=("parallel",),
            allow_input_fusion=[False, False, True],              # fuse pad/reshape into operand DMA
        ),
        cost_estimate=pl.CostEstimate(
            flops=2 * rows * LANES,
            transcendentals=0,
            bytes_accessed=2 * 4 * rows * LANES,
        ),
    )(a, c, x2d)

    # Restore the (N, 1) PyTorch output shape.  If N is lane-aligned this is a
    # pure bitcast; otherwise slice off the <=127 padded tail lanes (they hold
    # a*pad + c, which must not be exposed to the caller).
    if padded_n == n:
        return out2d.reshape(n, 1)
    return out2d.reshape(-1)[:n].reshape(n, 1)


def init_params(key):
    """Deterministic init mimicking PyTorch's default Linear init
    (uniform(-1/sqrt(fan_in), 1/sqrt(fan_in)))."""
    dims = [(1, 32), (32, 64), (64, 1)]
    params = {}
    keys = jax.random.split(key, 2 * len(dims))
    for i, (fan_in, fan_out) in enumerate(dims):
        bound = 1.0 / (fan_in ** 0.5)
        w = jax.random.uniform(keys[2 * i], (fan_out, fan_in),
                               minval=-bound, maxval=bound, dtype=jnp.float32)
        b = jax.random.uniform(keys[2 * i + 1], (fan_out,),
                               minval=-bound, maxval=bound, dtype=jnp.float32)
        params[f"w{i+1}_t"] = w.T                    # (fan_in, fan_out)
        params[f"b{i+1}"] = b.reshape(1, fan_out)    # row bias
    return params


def line_forward_ref(x, params):
    h1 = x @ params["w1_t"] + params["b1"]
    h2 = h1 @ params["w2_t"] + params["b2"]
    return h2 @ params["w3_t"] + params["b3"]


if __name__ == "__main__":
    key = jax.random.PRNGKey(0)
    pkey, xkey = jax.random.split(key)
    params = init_params(pkey)

    # Small batch of scalar inputs, matching nn.Linear(1, ...) semantics.
    x = jax.random.normal(xkey, (8, 1), dtype=jnp.float32)
    y = line_forward(x, params)
    jax.block_until_ready(y)
    y_ref = line_forward_ref(x, params)
    assert y.shape == (8, 1)
    assert jnp.allclose(y, y_ref, atol=1e-4, rtol=1e-4)

    # Non-multiple-of-128 batch: exercises the tiny tail pad, a partial final
    # block, and the output un-padding slice (default tile sizing).
    x_big = jax.random.normal(jax.random.PRNGKey(1), (2050, 1), dtype=jnp.float32)
    y_big = line_forward(x_big, params)
    jax.block_until_ready(y_big)
    y_big_ref = line_forward_ref(x_big, params)
    assert y_big.shape == (2050, 1)
    assert jnp.allclose(y_big, y_big_ref, atol=1e-4, rtol=1e-4)

    # Lane-aligned batch: no pad, no output slice (pure bitcast reshapes),
    # multi-step grid.
    x_aligned = jax.random.normal(jax.random.PRNGKey(2), (4096, 1), dtype=jnp.float32)
    y_aligned = line_forward(x_aligned, params)
    jax.block_until_ready(y_aligned)
    y_aligned_ref = line_forward_ref(x_aligned, params)
    assert y_aligned.shape == (4096, 1)
    assert jnp.allclose(y_aligned, y_aligned_ref, atol=1e-4, rtol=1e-4)

    print("KERNEL_OK")
</pallas_src>

<mosaic_0001>
module attributes {stable_mosaic.version = 11 : i64} {
  func.func @affine_kernel(%arg0: i32, %arg1: memref<1x1xf32, #tpu.memory_space<smem>>, %arg2: memref<1x1xf32, #tpu.memory_space<smem>>, %arg3: memref<8x128xf32, #tpu.memory_space<vmem>>, %arg4: memref<8x128xf32, #tpu.memory_space<vmem>>) attributes {dimension_semantics = [#tpu.dimension_semantics<parallel>], iteration_bounds = array<i64: 1>, scalar_prefetch = 0 : i64, scratch_operands = 0 : i64, tpu.core_type = #tpu.core_type<tc>, window_params = [{transform_indices = @transform_0, window_bounds = array<i64: 1, 1>}, {transform_indices = @transform_1, window_bounds = array<i64: 1, 1>}, {transform_indices = @transform_2, window_bounds = array<i64: 8, 128>}, {transform_indices = @transform_3, window_bounds = array<i64: 8, 128>}]} {
    %c0 = arith.constant 0 : index
    %c0_0 = arith.constant 0 : index
    %0 = memref.load %arg1[%c0, %c0_0] : memref<1x1xf32, #tpu.memory_space<smem>>
    %c0_1 = arith.constant 0 : index
    %c0_2 = arith.constant 0 : index
    %1 = memref.load %arg2[%c0_1, %c0_2] : memref<1x1xf32, #tpu.memory_space<smem>>
    %c0_3 = arith.constant 0 : index
    %c0_4 = arith.constant 0 : index
    %2 = vector.load %arg3[%c0_3, %c0_4] : memref<8x128xf32, #tpu.memory_space<vmem>>, vector<8x128xf32>
    %3 = vector.broadcast %0 : f32 to vector<8x128xf32>
    %4 = arith.mulf %2, %3 : vector<8x128xf32>
    %5 = vector.broadcast %1 : f32 to vector<8x128xf32>
    %6 = arith.addf %4, %5 : vector<8x128xf32>
    %c0_5 = arith.constant 0 : index
    %c0_6 = arith.constant 0 : index
    %7 = vector.load %arg4[%c0_5, %c0_6] : memref<8x128xf32, #tpu.memory_space<vmem>>, vector<8x128xf32>
    tpu.vector_store %arg4[%c0_5, %c0_6], %6 {strides = array<i32>} : memref<8x128xf32, #tpu.memory_space<vmem>>, vector<8x128xf32>,
    return
  }
  func.func @transform_0(%arg0: i32) -> (i32, i32) {
    %c0_i32 = arith.constant 0 : i32
    %c0_i32_0 = arith.constant 0 : i32
    %c0_i32_1 = arith.constant 0 : i32
    return %c0_i32, %c0_i32_0 : i32, i32
  }
  func.func @transform_1(%arg0: i32) -> (i32, i32) {
    %c0_i32 = arith.constant 0 : i32
    %c0_i32_0 = arith.constant 0 : i32
    %c0_i32_1 = arith.constant 0 : i32
    return %c0_i32, %c0_i32_0 : i32, i32
  }
  func.func @transform_2(%arg0: i32) -> (i32, i32) {
    %c0_i32 = arith.constant 0 : i32
    %c0_i32_0 = arith.constant 0 : i32
    return %arg0, %c0_i32 : i32, i32
  }
  func.func @transform_3(%arg0: i32) -> (i32, i32) {
    %c0_i32 = arith.constant 0 : i32
    %c0_i32_0 = arith.constant 0 : i32
    return %arg0, %c0_i32 : i32, i32
  }
}

</mosaic_0001>

<bundles_post_ra>
// kernel: tpu_custom_call.1
= control target key start
LH: loop header
LB: loop body
LE: loop exit
PB: predicated region body
PF: predicated region fallthrough
CT: control target
= control target key end

     0   :  { %10 = vsyncpa [#allocation5], 0  ;;  %s112_s0 = inlined_call_operand.<no memory space> [shape: f32[1,1], index: 0, kind: input, shape index: {}]   ;;  %s113_s1 = inlined_call_operand.<no memory space> [shape: f32[1,1], index: 1, kind: input, shape index: {}]   ;;  %s114_s2 = inlined_call_operand.vmem [shape: f32[1,128], index: 2, kind: input, shape index: {}]   ;;  %s115_s3 = inlined_call_operand.hbm [shape: f32[1,128], index: 3, kind: output, shape index: {}]  }
   0x1   :  { %v19_v0 = vld [vmem:[%s114_s2] sm:$0xff]  ;;  %v20_v1 = vstv %s112_s0  ;;  %v22_v2 = vstv %s113_s1 }
   0x2   :  { %v21_v3 = vmul.f32 %v20_v1, %v19_v0 }
   0x4   :  { %v23_v4 = vadd.f32 %v22_v2, %v21_v3 }
   0x6   :  { %24 = vst [vmem:[#allocation4] sm:$0xff] %v23_v4 }
   0x7   :  { %29 = vsyncadd [#allocation5], 112  ;;  %s68_s18 = smov [#allocation4]  }
   0x8   :  { %s30_s19 = sshll.u32 %s68_s18, 4  ;;  %s31_s19 = int_to_ptr.vmem [resolvable:$true] %s30_s19 }
   0x9   :  { %s44_s20 = scalar_lea.vmem %s31_s19, 16  ;;  %s48_s21 = scalar_lea.vmem %s31_s19, 128 }
   0xa   :  { %p45_p0 = scmp.ne.s32.totalorder %s31_s19, %s44_s20  ;;  %p49_p1 = scmp.lt.s32.totalorder %s31_s19, %s31_s19 }
   0xb   :  { %p50_p2 = scmp.lt.s32.totalorder %s48_s21, %s44_s20 }
   0xd   :  { %p51_p3 = por %p50_p2, %p49_p1 }
   0xf   :  { %p52_p4 = pnand %p51_p3, %p45_p0 }
  0x11   :  { %55 = shalt.err (!%p52_p4)
}
  0x12   :  { %s56_s22 = scalar_lea.hbm %s115_s3, 16 }
  0x13   :  { %p57_p5 = scmp.ne.s32.totalorder %s115_s3, %s56_s22  ;;  %p60_p6 = scmp.lt.u32.totalorder %s56_s22, %s115_s3 }
  0x15   :  { %p62_p7 = pnand %p60_p6, %p57_p5 }
  0x17   :  { %65 = shalt.err (!%p62_p7)
}
  0x18   :  { %s69_s26 = smov 16   ;;  %s70_s27 = smov 1  }
  0x19   :  { %36 = dma.vmem_to_hbm [thread:$0]  %s31_s19, 16, %s115_s3, [#allocation5], %s69_s26, %s69_s26, %s70_s27  }
  0x1a   :  { %66 = dma.done.wait [#allocation5], 128  }
  0x1b   :  { %67 = vsyncadd [#allocation5], 4294967168 }
  0x1c   :  { %40 = vsyncpa [#allocation5], 1 }

</bundles_post_ra>
